<compile_context>
chip_gen: v5e
topology: v5e:2x2
jax: 0.10.0
libtpu: 0.0.40
codegen_flags: <defaults>
</compile_context>

<pallas_src>
import numpy as np
import jax
import jax.numpy as jnp
from jax.experimental import pallas as pl
from jax.experimental.pallas import tpu as pltpu

_LEAKY_SLOPE = 0.01   # PyTorch LeakyReLU default
_BN_EPS = 1e-5        # PyTorch BatchNorm2d default
_HW_CHUNK = 512       # lanes per reduction slab (multiple of 128)


def _channel_attention_kernel(x_ref, m_ref, b3_ref, w1t_ref, b1_ref,
                              w2t_ref, b2_ref, o_ref):
    NB, C, HW = x_ref.shape

    # att[n,c] = sum_hw x[n,c,hw] * M[c,hw] + b3[c]
    # Chunked over HW so the f32 widen never materializes a full-block temp.
    acc = jnp.zeros((NB, C), jnp.float32)
    for start in range(0, HW, _HW_CHUNK):
        size = min(_HW_CHUNK, HW - start)
        xs = x_ref[:, :, start:start + size].astype(jnp.float32)   # (NB,C,sz)
        ms = m_ref[:, start:start + size]                           # (C, sz)
        acc = acc + jnp.sum(xs * ms[None, :, :], axis=-1)
    att = acc + b3_ref[...]                                         # (NB, C)

    # 1x1 conv C -> C//2 + LeakyReLU, batched over the NB fused images (MXU)
    h = jnp.dot(att, w1t_ref[...],
                preferred_element_type=jnp.float32) + b1_ref[...]   # (NB,C//2)
    h = jnp.where(h > 0, h, _LEAKY_SLOPE * h)

    # 1x1 conv C//2 -> C + sigmoid
    s = jnp.dot(h, w2t_ref[...],
                preferred_element_type=jnp.float32) + b2_ref[...]   # (NB, C)
    s = jax.nn.sigmoid(s)

    # channel-attention scaled input (broadcast over lanes = spatial)
    scale = s.astype(o_ref.dtype)[:, :, None]                       # (NB,C,1)
    o_ref[...] = (x_ref[...] * scale).astype(o_ref.dtype)


def _adaptive_pool_matrix(in_size, out_size):
    """Row-stochastic matrix P (out_size, in_size) reproducing PyTorch
    adaptive_avg_pool bin boundaries [floor(i*I/O), ceil((i+1)*I/O))."""
    P = np.zeros((out_size, in_size), dtype=np.float32)
    for i in range(out_size):
        s = (i * in_size) // out_size
        e = -((-(i + 1) * in_size) // out_size)  # ceil
        P[i, s:e] = 1.0 / (e - s)
    return P


def _vmem_capacity_bytes():
    try:
        info = pltpu.get_tpu_info()
        cap = getattr(info, "vmem_capacity_bytes", None)
        if cap:
            return int(cap)
    except Exception:
        pass
    return 64 * 1024 * 1024  # conservative default (v7x per-TC VMEM)


def _pick_nb(N, C, HW, itemsize, vmem_limit):
    """Largest exact divisor of N whose VMEM footprint fits, preferring an
    even grid count (>= 4 when possible) for v7x megacore sharding while
    still giving single-TC chips pipeline overlap. No padding ever."""
    per_image_io = C * HW * itemsize
    chunk = min(HW, _HW_CHUNK)
    # constant operands (M + weights + biases), counted double-buffered
    const_bytes = 2 * (C * HW * 4 + 2 * C * (C // 2) * 4 + (2 * C + C // 2) * 4)
    # per fused image: chunked f32 reduction slab + store-path slack
    temp_per_image = C * chunk * 4 + per_image_io
    margin = 4 * 1024 * 1024  # Mosaic internal scratch headroom
    avail = max(vmem_limit - const_bytes - margin, per_image_io)
    nb_budget = max(1, avail // (4 * per_image_io + temp_per_image))

    divs = [d for d in range(1, N + 1) if N % d == 0 and d <= nb_budget]
    if not divs:
        divs = [1]
    for pred in (lambda g: g % 2 == 0 and g >= 4,   # even and deep enough
                 lambda g: g % 2 == 0,              # at least even (2-TC v7x)
                 lambda g: g >= 2):                 # at least some overlap
        cands = [d for d in divs if pred(N // d)]
        if cands:
            return max(cands)
    return max(divs)


def channel_attention_pallas(x, params):
    N, C, H, W = x.shape
    HW = H * W
    dtype = x.dtype
    itemsize = jnp.dtype(dtype).itemsize

    # pooling matrices (PyTorch adaptive_avg_pool2d semantics)
    Pr = jnp.asarray(_adaptive_pool_matrix(H, 3))                  # (3, H)
    Pc = jnp.asarray(_adaptive_pool_matrix(W, 3))                  # (3, W)

    # fold eval-mode BatchNorm into the bias-free depthwise conv weight
    alpha = params['bn_gamma'] / jnp.sqrt(params['bn_var'] + _BN_EPS)   # (C,)
    w3f = (params['w3'] * alpha[:, None, None]).reshape(C, 9)           # (C, 9)
    b3 = params['bn_beta'] - params['bn_mean'] * alpha                  # (C,)

    # collapse adaptive-pool + depthwise 3x3 "valid" conv into one per-channel
    # spatial weighting:  att[n,c] = sum_hw x[n,c,hw] * M[c,hw] + b3[c]
    PT = jnp.einsum('ih,jw->hwij', Pr, Pc).reshape(HW, 9)          # (HW, 9)
    M = w3f @ PT.T                                                 # (C, HW) f32

    W1t = params['w1'].reshape(C // 2, C).T                        # (C, C//2)
    b1 = params['b1']                                              # (C//2,)
    W2t = params['w2'].reshape(C, C // 2).T                        # (C//2, C)
    b2 = params['b2']                                              # (C,)

    # free (contiguous) reshape — no extra HBM pass
    xf = x.reshape(N, C, HW)

    # generation-aware VMEM limit & batch-fusion factor (no padding of N)
    phys_vmem = _vmem_capacity_bytes()
    vmem_limit = int(min(phys_vmem * 3 // 4, 100 * 1024 * 1024))
    NB = _pick_nb(N, C, HW, itemsize, vmem_limit)
    num_blocks = N // NB

    cost = pl.CostEstimate(
        flops=int(3 * N * C * HW + 4 * N * C * (C // 2) + 2 * N * C),
        transcendentals=int(N * C),
        bytes_accessed=int(2 * N * C * HW * itemsize
                           + C * HW * 4 + 2 * C * (C // 2) * 4),
    )

    out = pl.pallas_call(
        _channel_attention_kernel,
        out_shape=jax.ShapeDtypeStruct((N, C, HW), dtype),
        grid_spec=pltpu.PrefetchScalarGridSpec(
            num_scalar_prefetch=0,
            grid=(num_blocks,),
            in_specs=[
                pl.BlockSpec((NB, C, HW), lambda b: (b, 0, 0)),      # x
                pl.BlockSpec((C, HW), lambda b: (0, 0)),             # M (pool+dw+BN)
                pl.BlockSpec((1, C), lambda b: (0, 0)),              # b3 (folded BN)
                pl.BlockSpec((C, C // 2), lambda b: (0, 0)),         # W1^T
                pl.BlockSpec((1, C // 2), lambda b: (0, 0)),         # b1
                pl.BlockSpec((C // 2, C), lambda b: (0, 0)),         # W2^T
                pl.BlockSpec((1, C), lambda b: (0, 0)),              # b2
            ],
            out_specs=pl.BlockSpec((NB, C, HW), lambda b: (b, 0, 0)),
        ),
        compiler_params=pltpu.CompilerParams(
            dimension_semantics=("parallel",),
            vmem_limit_bytes=vmem_limit,
        ),
        cost_estimate=cost,
    )(xf, M, b3.reshape(1, C), W1t, b1.reshape(1, C // 2), W2t,
      b2.reshape(1, C))

    return out.reshape(N, C, H, W)


# ---------------------------------------------------------------------------
# Pure-JAX reference built from the RAW (unfolded) module parameters, with an
# independent adaptive-pool implementation (direct PyTorch bin slicing), so
# bugs in the pool-matrix / BN-folding derivation are caught.
# ---------------------------------------------------------------------------
def _adaptive_avg_pool2d_ref(x, out=3):
    N, C, H, W = x.shape
    rows = []
    for i in range(out):
        hs = (i * H) // out
        he = -((-(i + 1) * H) // out)
        cols = []
        for j in range(out):
            ws = (j * W) // out
            we = -((-(j + 1) * W) // out)
            cols.append(jnp.mean(x[:, :, hs:he, ws:we], axis=(2, 3)))
        rows.append(jnp.stack(cols, axis=-1))
    return jnp.stack(rows, axis=-2)                                # (N, C, 3, 3)


def channel_attention_reference(x, params):
    N, C, H, W = x.shape
    y = _adaptive_avg_pool2d_ref(x, 3)                             # (N,C,3,3)
    # depthwise 3x3 "valid" conv on a 3x3 input (bias=False)
    att = jnp.einsum('ncij,cij->nc', y, params['w3'])              # (N, C)
    # eval-mode BatchNorm
    att = ((att - params['bn_mean'])
           / jnp.sqrt(params['bn_var'] + _BN_EPS)
           * params['bn_gamma'] + params['bn_beta'])
    # Dropout2d is identity in eval mode
    h = att @ params['w1'].T + params['b1']
    h = jnp.where(h > 0, h, _LEAKY_SLOPE * h)
    s = jax.nn.sigmoid(h @ params['w2'].T + params['b2'])
    return x * s[:, :, None, None]


def make_params(key, channel):
    ks = jax.random.split(key, 9)
    C = channel
    return {
        # depthwise conv weight (C, 1, 3, 3) -> stored (C, 3, 3); bias=False
        'w3': 0.2 * jax.random.normal(ks[0], (C, 3, 3), jnp.float32),
        'bn_gamma': 0.5 + jax.random.uniform(ks[1], (C,), jnp.float32),
        'bn_beta': 0.1 * jax.random.normal(ks[2], (C,), jnp.float32),
        'bn_mean': 0.1 * jax.random.normal(ks[3], (C,), jnp.float32),
        'bn_var': 0.5 + jax.random.uniform(ks[4], (C,), jnp.float32),
        # Conv2d(C, C//2, 1) weight (C//2, C) + bias
        'w1': 0.3 * jax.random.normal(ks[5], (C // 2, C), jnp.float32),
        'b1': 0.1 * jax.random.normal(ks[6], (C // 2,), jnp.float32),
        # Conv2d(C//2, C, 1) weight (C, C//2) + bias
        'w2': 0.3 * jax.random.normal(ks[7], (C, C // 2), jnp.float32),
        'b2': 0.1 * jax.random.normal(ks[8], (C,), jnp.float32),
    }


if __name__ == "__main__":
    key = jax.random.PRNGKey(0)
    k_x, k_p = jax.random.split(key)

    N, C, H, W = 2, 4, 16, 16
    x = jax.random.normal(k_x, (N, C, H, W), jnp.float32)
    params = make_params(k_p, C)

    out = channel_attention_pallas(x, params)
    out = jax.block_until_ready(out)

    ref = jax.block_until_ready(channel_attention_reference(x, params))

    np.testing.assert_allclose(np.asarray(out), np.asarray(ref),
                               rtol=1e-4, atol=1e-5)
    print("KERNEL_OK")
</pallas_src>

<mosaic_0001>
module attributes {stable_mosaic.version = 11 : i64} {
  func.func @_channel_attention_kernel(%arg0: i32, %arg1: memref<1x4x256xf32, #tpu.memory_space<vmem>>, %arg2: memref<4x256xf32, #tpu.memory_space<vmem>>, %arg3: memref<1x4xf32, #tpu.memory_space<vmem>>, %arg4: memref<4x2xf32, #tpu.memory_space<vmem>>, %arg5: memref<1x2xf32, #tpu.memory_space<vmem>>, %arg6: memref<2x4xf32, #tpu.memory_space<vmem>>, %arg7: memref<1x4xf32, #tpu.memory_space<vmem>>, %arg8: memref<1x4x256xf32, #tpu.memory_space<vmem>>) attributes {dimension_semantics = [#tpu.dimension_semantics<parallel>], iteration_bounds = array<i64: 2>, scalar_prefetch = 0 : i64, scratch_operands = 0 : i64, tpu.core_type = #tpu.core_type<tc>, window_params = [{transform_indices = @transform_0, window_bounds = array<i64: 1, 4, 256>}, {pipeline_mode = #tpu.pipeline_mode<synchronous>, transform_indices = @transform_1, window_bounds = array<i64: 4, 256>}, {pipeline_mode = #tpu.pipeline_mode<synchronous>, transform_indices = @transform_2, window_bounds = array<i64: 1, 4>}, {pipeline_mode = #tpu.pipeline_mode<synchronous>, transform_indices = @transform_3, window_bounds = array<i64: 4, 2>}, {pipeline_mode = #tpu.pipeline_mode<synchronous>, transform_indices = @transform_4, window_bounds = array<i64: 1, 2>}, {pipeline_mode = #tpu.pipeline_mode<synchronous>, transform_indices = @transform_5, window_bounds = array<i64: 2, 4>}, {pipeline_mode = #tpu.pipeline_mode<synchronous>, transform_indices = @transform_6, window_bounds = array<i64: 1, 4>}, {transform_indices = @transform_7, window_bounds = array<i64: 1, 4, 256>}]} {
    %cst = arith.constant 0.000000e+00 : f32
    %0 = vector.broadcast %cst : f32 to vector<1x4xf32>
    %c0 = arith.constant 0 : index
    %c0_0 = arith.constant 0 : index
    %c0_1 = arith.constant 0 : index
    %1 = vector.load %arg1[%c0, %c0_0, %c0_1] : memref<1x4x256xf32, #tpu.memory_space<vmem>>, vector<1x4x256xf32>
    %c0_2 = arith.constant 0 : index
    %c0_3 = arith.constant 0 : index
    %2 = vector.load %arg2[%c0_2, %c0_3] : memref<4x256xf32, #tpu.memory_space<vmem>>, vector<4x256xf32>
    %3 = vector.shape_cast %2 : vector<4x256xf32> to vector<1x4x256xf32>
    %4 = arith.mulf %1, %3 : vector<1x4x256xf32>
    %cst_4 = arith.constant dense<0.000000e+00> : vector<1x4xf32>
    %5 = vector.multi_reduction <add>, %4, %cst_4 [2] : vector<1x4x256xf32> to vector<1x4xf32>
    %6 = arith.addf %0, %5 : vector<1x4xf32>
    %c0_5 = arith.constant 0 : index
    %c0_6 = arith.constant 0 : index
    %7 = vector.load %arg3[%c0_5, %c0_6] : memref<1x4xf32, #tpu.memory_space<vmem>>, vector<1x4xf32>
    %8 = arith.addf %6, %7 : vector<1x4xf32>
    %c0_7 = arith.constant 0 : index
    %c0_8 = arith.constant 0 : index
    %9 = vector.load %arg4[%c0_7, %c0_8] : memref<4x2xf32, #tpu.memory_space<vmem>>, vector<4x2xf32>
    %cst_9 = arith.constant dense<0.000000e+00> : vector<1x2xf32>
    %10 = tpu.matmul %8, %9, %cst_9 {dimension_numbers = #tpu.dot_dimension_numbers<[1], [0], [0], [1], [0, 0, 1, 1], [], []>} : vector<1x4xf32>, vector<4x2xf32>, vector<1x2xf32> -> vector<1x2xf32>
    %c0_10 = arith.constant 0 : index
    %c0_11 = arith.constant 0 : index
    %11 = vector.load %arg5[%c0_10, %c0_11] : memref<1x2xf32, #tpu.memory_space<vmem>>, vector<1x2xf32>
    %12 = arith.addf %10, %11 : vector<1x2xf32>
    %cst_12 = arith.constant 0.000000e+00 : f32
    %13 = vector.broadcast %cst_12 : f32 to vector<1x2xf32>
    %14 = arith.cmpf ogt, %12, %13 : vector<1x2xf32>
    %cst_13 = arith.constant 0.00999999977 : f32
    %15 = vector.broadcast %cst_13 : f32 to vector<1x2xf32>
    %16 = arith.mulf %15, %12 : vector<1x2xf32>
    %17 = arith.select %14, %12, %16 : vector<1x2xi1>, vector<1x2xf32>
    %c0_14 = arith.constant 0 : index
    %c0_15 = arith.constant 0 : index
    %18 = vector.load %arg6[%c0_14, %c0_15] : memref<2x4xf32, #tpu.memory_space<vmem>>, vector<2x4xf32>
    %cst_16 = arith.constant dense<0.000000e+00> : vector<1x4xf32>
    %19 = tpu.matmul %17, %18, %cst_16 {dimension_numbers = #tpu.dot_dimension_numbers<[1], [0], [0], [1], [0, 0, 1, 1], [], []>} : vector<1x2xf32>, vector<2x4xf32>, vector<1x4xf32> -> vector<1x4xf32>
    %c0_17 = arith.constant 0 : index
    %c0_18 = arith.constant 0 : index
    %20 = vector.load %arg7[%c0_17, %c0_18] : memref<1x4xf32, #tpu.memory_space<vmem>>, vector<1x4xf32>
    %21 = arith.addf %19, %20 : vector<1x4xf32>
    %22 = arith.negf %21 : vector<1x4xf32>
    %23 = math.exp %22 : vector<1x4xf32>
    %cst_19 = arith.constant 1.000000e+00 : f32
    %24 = vector.broadcast %cst_19 : f32 to vector<1x4xf32>
    %25 = arith.addf %24, %23 : vector<1x4xf32>
    %26 = arith.divf %24, %25 : vector<1x4xf32>
    %27 = vector.shape_cast %26 : vector<1x4xf32> to vector<1x4x1xf32>
    %c0_20 = arith.constant 0 : index
    %c0_21 = arith.constant 0 : index
    %c0_22 = arith.constant 0 : index
    %28 = vector.load %arg1[%c0_20, %c0_21, %c0_22] : memref<1x4x256xf32, #tpu.memory_space<vmem>>, vector<1x4x256xf32>
    %29 = vector.broadcast %27 : vector<1x4x1xf32> to vector<1x4x256xf32>
    %30 = arith.mulf %28, %29 : vector<1x4x256xf32>
    %c0_23 = arith.constant 0 : index
    %c0_24 = arith.constant 0 : index
    %c0_25 = arith.constant 0 : index
    %31 = vector.load %arg8[%c0_23, %c0_24, %c0_25] : memref<1x4x256xf32, #tpu.memory_space<vmem>>, vector<1x4x256xf32>
    tpu.vector_store %arg8[%c0_23, %c0_24, %c0_25], %30 {strides = array<i32>} : memref<1x4x256xf32, #tpu.memory_space<vmem>>, vector<1x4x256xf32>,
    return
  }
  func.func @transform_0(%arg0: i32) -> (i32, i32, i32) {
    %c0_i32 = arith.constant 0 : i32
    %c0_i32_0 = arith.constant 0 : i32
    %c0_i32_1 = arith.constant 0 : i32
    return %arg0, %c0_i32, %c0_i32_0 : i32, i32, i32
  }
  func.func @transform_1(%arg0: i32) -> (i32, i32) {
    %c0_i32 = arith.constant 0 : i32
    %c0_i32_0 = arith.constant 0 : i32
    %c0_i32_1 = arith.constant 0 : i32
    return %c0_i32, %c0_i32_0 : i32, i32
  }
  func.func @transform_2(%arg0: i32) -> (i32, i32) {
    %c0_i32 = arith.constant 0 : i32
    %c0_i32_0 = arith.constant 0 : i32
    %c0_i32_1 = arith.constant 0 : i32
    return %c0_i32, %c0_i32_0 : i32, i32
  }
  func.func @transform_3(%arg0: i32) -> (i32, i32) {
    %c0_i32 = arith.constant 0 : i32
    %c0_i32_0 = arith.constant 0 : i32
    %c0_i32_1 = arith.constant 0 : i32
    return %c0_i32, %c0_i32_0 : i32, i32
  }
  func.func @transform_4(%arg0: i32) -> (i32, i32) {
    %c0_i32 = arith.constant 0 : i32
    %c0_i32_0 = arith.constant 0 : i32
    %c0_i32_1 = arith.constant 0 : i32
    return %c0_i32, %c0_i32_0 : i32, i32
  }
  func.func @transform_5(%arg0: i32) -> (i32, i32) {
    %c0_i32 = arith.constant 0 : i32
    %c0_i32_0 = arith.constant 0 : i32
    %c0_i32_1 = arith.constant 0 : i32
    return %c0_i32, %c0_i32_0 : i32, i32
  }
  func.func @transform_6(%arg0: i32) -> (i32, i32) {
    %c0_i32 = arith.constant 0 : i32
    %c0_i32_0 = arith.constant 0 : i32
    %c0_i32_1 = arith.constant 0 : i32
    return %c0_i32, %c0_i32_0 : i32, i32
  }
  func.func @transform_7(%arg0: i32) -> (i32, i32, i32) {
    %c0_i32 = arith.constant 0 : i32
    %c0_i32_0 = arith.constant 0 : i32
    %c0_i32_1 = arith.constant 0 : i32
    return %arg0, %c0_i32, %c0_i32_0 : i32, i32, i32
  }
}

</mosaic_0001>

<bundles_post_ra>
// kernel: tpu_custom_call.1
= control target key start
LH: loop header
LB: loop body
LE: loop exit
PB: predicated region body
PF: predicated region fallthrough
CT: control target
= control target key end

     0   :  { %s967_s0 = inlined_call_operand.hbm [shape: f32[2,4,256], index: 0, kind: input, shape index: {}]   ;;  %s968_s1 = inlined_call_operand.hbm [shape: f32[4,256], index: 1, kind: input, shape index: {}]   ;;  %s969_s2 = inlined_call_operand.vmem [shape: f32[1,4], index: 2, kind: input, shape index: {}]   ;;  %s970_s3 = inlined_call_operand.vmem [shape: f32[4,2], index: 3, kind: input, shape index: {}]   ;;  %s971_s4 = inlined_call_operand.vmem [shape: f32[1,2], index: 4, kind: input, shape index: {}]   ;;  %s972_s5 = inlined_call_operand.vmem [shape: f32[2,4], index: 5, kind: input, shape index: {}]   ;;  %s973_s6 = inlined_call_operand.vmem [shape: f32[1,4], index: 6, kind: input, shape index: {}]   ;;  %s974_s7 = inlined_call_operand.hbm [shape: f32[2,4,256], index: 7, kind: output, shape index: {}]  }
   0x1   :  { %975 = sst [smem:[#allocation11_spill]] %s968_s1 }
   0x2   :  { %12 = vsyncpa [#allocation3], 0 }
   0x3   :  { %14 = vsyncpa [#allocation3 + $0x1], 0 }
   0x4   :  { %15 = vsyncpa [#allocation6], 0 }
   0x5   :  { %16 = vsyncpa [#allocation4], 0 }
   0x6   :  { %18 = vsyncpa [#allocation4 + $0x1], 0  ;;  %s803_s24 = smov 0   ;;  %s805_s25 = smov 0  }
   0x7   :  { %s807_s26 = smov 0   ;;  %s809_s27 = smov 0  }
   0x8 LB: > { %s824_s28 = sadd.s32 4294967295, %s758_s27   ;;  %s538_s29 = sadd.s32 4294967294, %s758_s27   ;;  %s758_s27 = sphi %s809_s27, %s986_s27   ;;  %s754_s26 = sphi %s807_s26, %s985_s26   ;;  %s750_s25 = sphi %s805_s25, %s984_s25   ;;  %s746_s24 = sphi %s803_s24, %s983_s24  }
   0x9   : > { %p44_p0 = scmp.ne.s32.totalorder %s750_s25, %s746_s24  ;;  %p45_p1 = scmp.eq.s32.totalorder %s824_s28, 0 }
   0xa   : > { %p194_p2 = scmp.eq.s32.totalorder %s824_s28, 1  ;;  %p200_p3 = scmp.eq.s32.totalorder %s538_s29, 1 }
   0xb   : > { %p833_p4 = por %p45_p1, %p44_p0  ;;  %p539_p5 = scmp.ge.s32.totalorder %s758_s27, 1 }
   0xc   : > { %p838_p6 = por %p200_p3, %p44_p0  ;;  %p207_p7 = scmp.lt.s32.totalorder %s758_s27, 3 }
   0xd   : > { %s978_s1 = sld [smem:[#allocation11_spill]]  ;;  %s760_s13 = smov [#allocation5]  }
   0xe   : > { %p846_p8 = pnand %p539_p5, %p207_p7  ;;  %s221_s14 = sshll.u32 %s760_s13, 4  ;;  %s222_s14 = int_to_ptr.vmem [resolvable:$true] %s221_s14 }
   0xf   : > { %s856_s15 = sadd.s32 1, %s758_s27   ;;  %s31_s16 = sadd.s32 1, %s754_s26 }
  0x10   : > { %p569_p10 = pneg %p846_p8  ;;  %s28_s17 = ssub.s32 %s758_s27, %s856_s15 }
  0x11   : > { %p29_p12 = scmp.eq.s32.totalorder %s28_s17, 0  ;;  %p38_p13 = scmp.ne.s32.totalorder %s754_s26, %s750_s25 }
  0x12   : > { %p570_p11 = pnand %p569_p10, %p45_p1  ;;  %p39_p0 = scmp.eq.s32.totalorder %s758_s27, 0 }
  0x13   : > { %s219_s11 = sshll.u32 %s978_s1, 4  ;;  %p869_p3 = por %p194_p2, %p38_p13  ;;  %s220_s11 = int_to_ptr.hbm [resolvable:$true] %s219_s11 }
  0x14   : > { %572 = dma.hbm_to_vmem [thread:$0]  (!%p570_p11), %s220_s11, 128, %s222_s14, [#allocation6]  }
  0x15   : > { %s865_s18 = scalar_select %p29_p12, %s754_s26, %s31_s16  }
  0x16   : > { %p582_p5 = scmp.lt.s32.totalorder %s758_s27, 2  ;;  %s247_s20 = sand.u32 1, %s754_s26  }
  0x17   : > { %s559_s21 = sshll.u32 %s758_s27, 3  ;;  %p40_p7 = por %p39_p0, %p38_p13 }
  0x18   : > { %s542_s22 = sshll.u32 %s247_s20, 3  ;;  %s256_s9 = scalar_lea.hbm %s967_s0, %s559_s21 }
  0x19   : > { %s258_s10 = sshll.u32 %s256_s9, 4  ;;  %s251_s11 = scalar_lea.vmem [#allocation2], %s542_s22  ;;  %s259_s10 = int_to_ptr.hbm [resolvable:$true] %s258_s10 }
  0x1a   : > { %s260_s13 = sshll.u32 %s251_s11, 4  ;;  %p879_p10 = pnand %p582_p5, %p40_p7  ;;  %s261_s13 = int_to_ptr.vmem [resolvable:$true] %s260_s13 }
  0x1b   : > { %s248_s16 = scalar_lea.sflag [#allocation3], %s247_s20  ;;  %s658_s17 = sshra.s32 %s259_s10, 4  ;;  %s659_s17 = int_to_ptr.hbm [resolvable:$true] %s658_s17 }
  0x1c   : > { %s660_s1 = scalar_lea.hbm %s659_s17, 8  ;;  %p662_p11 = pneg %p879_p10 }
  0x1d   : > { %p661_p2 = scmp.ne.s32.totalorder %s659_s17, %s660_s1  ;;  %s665_s22 = scalar_lea.hbm %s967_s0, 16 }
  0x1e   : > { %p666_p0 = scmp.lt.s32.totalorder %s659_s17, %s967_s0  ;;  %p667_p5 = scmp.lt.s32.totalorder %s665_s22, %s660_s1 }
  0x1f   : > { %p663_p12 = pnand %p662_p11, %p661_p2 }
  0x20   : > { %p668_p7 = por %p667_p5, %p666_p0 }
  0x21   : > { %p664_p13 = pneg %p663_p12 }
  0x23   : > { %p669_p9 = pnand %p668_p7, %p664_p13 }
  0x25   : > { %672 = shalt.err (!%p669_p9)
}
  0x26   : > { %576 = dma.hbm_to_vmem [thread:$0]  (!%p879_p10), %s259_s10, 128, %s261_s13, %s248_s16  }
  0x27   : > { %269 = sbr.rel (%p846_p8) target bundleno = 726 (0x2d6), region = 48  ;;  %s896_s20 = sand.u32 (!%p846_p8), 1, %s750_s25  }
  0x28   : > { %s546_s11 = sshll.u32 (!%p846_p8), %s896_s20, 3  ;;  %s272_s21 = scalar_lea.sflag (!%p846_p8), [#allocation3], %s896_s20 }
  0x29   : > { %s275_s1 = scalar_lea.vmem (!%p846_p8), [#allocation2], %s546_s11 }
  0x2c   : > { %733 = dma.done.wait (%p833_p4), %s272_s21, 128  }
  0x2d   : > { %735 = vsyncadd (%p833_p4), %s272_s21, 4294967168 }
  0x2e   : > { %737 = dma.done.wait (%p45_p1), [#allocation6], 128  }
  0x2f   : > { %739 = vsyncadd (%p45_p1), [#allocation6], 4294967168  ;;  %v331_v0 = vlaneseq  ;;  %v910_v2 = vld [vmem:[%s275_s1] sm:$0xff]  ;;  %v313_v3 = vld [vmem:[#allocation5] sm:$0xff]  ;;  %vm321_vm0 = vcmask 1043456   ;;  %v761_v11 = vmov 0  }
  0x30   : > { %v314_v4 = vmul.f32 %v313_v3, %v910_v2  ;;  %v623_v10 = vld [vmem:[%s969_s2] ss:$0 sm:$0xff]  ;;  %621 = vset.pattern.permute.xlu1 %v761_v11  ;;  %vm348_vm1 = vcmask 31744   ;;  %vm383_vm2 = vcmask 1041408   ;;  %vm379_vm4 = vcmask 15360   ;;  %s560_s9 = sshll.u32 %s824_s28, 3 }
  0x31   : > { %v332_v1 = vshrl.u32 %v331_v0, 7  ;;  %v339_v15 = vld [vmem:[%s970_s3] sm:$0xf]  ;;  %v346_v16 = vand.u32 127, %v331_v0  ;;  %v762_v42 = vmov 839922192   ;;  %s453_s30 = scalar_lea.hbm %s974_s7, %s560_s9 }
  0x32   : > { %316 = vst [vmem:[#allocation1] ss:$2 sm:$0xff] %v314_v4  ;;  %549 = vmatpush.msk.msra.mxu0 %vm321_vm0, %v339_v15  ;;  %v377_v19 = vld [vmem:[%s972_s5] sm:$0x3]  ;;  %v435_v43 = vunpack.c.l.s4 %v762_v42  ;;  %s311_s12 = scalar_lea.vmem [#allocation7], %s546_s11  ;;  %s457_s13 = sshll.u32 %s453_s30, 4  ;;  %s458_s13 = int_to_ptr.hbm [resolvable:$true] %s457_s13 }
  0x33   : > { %620 = vset.pattern.permute.xlu0 %v332_v1  ;;  %551 = vmatpush.msk.msra.mxu1 %vm383_vm2, %v377_v19  ;;  %v340_v20 = vld [vmem:[%s971_s4] sm:$0x1]  ;;  %s455_s10 = sshll.u32 %s311_s12, 4  ;;  %s442_s14 = scalar_lea.sflag [#allocation4], %s896_s20  ;;  %s456_s10 = int_to_ptr.vmem [resolvable:$true] %s455_s10 }
  0x34   : > { %v378_v25 = vld [vmem:[%s973_s6] sm:$0x1]  ;;  %v436_v44 = vunpack.c.0.s8 %v435_v43  ;;  %s702_s16 = sshra.s32 %s458_s13, 4  ;;  %s708_s11 = scalar_lea.hbm %s974_s7, 16  ;;  %s703_s16 = int_to_ptr.hbm [resolvable:$true] %s702_s16 }
  0x35   : > { %s704_s28 = scalar_lea.hbm %s703_s16, 8  ;;  %p709_p9 = scmp.lt.s32.totalorder %s703_s16, %s974_s7 }
  0x36   : > { %p705_p1 = scmp.ne.s32.totalorder %s703_s16, %s704_s28  ;;  %p710_p10 = scmp.lt.s32.totalorder %s708_s11, %s704_s28 }
  0x38   : > { %p706_p4 = pnand %p705_p1, %p869_p3  ;;  %p711_p2 = por %p710_p10, %p709_p9 }
  0x39   : > { %v317_v5 = vld.sshfl [vmem:[#allocation1] sm:$0xff pattern:$0x75316420]  ;;  %v318_v6 = vld.sshfl [vmem:[#allocation1 + $0x8] sm:$0xff pattern:$0x75316420] }
  0x3a   : > { %v322_v7 = vsel %vm321_vm0, %v317_v5, 0.0  ;;  %v323_v8 = vsel %vm321_vm0, %v318_v6, 0.0  ;;  %p707_p8 = pneg %p706_p4 }
  0x3b   : > { %v324_v9 = vadd.f32 %v323_v8, %v322_v7 }
  0x3c   : > { %p712_p11 = pnand %p711_p2, %p707_p8 }
  0x3d   : > { %325 = vadd.xlane.f32.xlu0 %v324_v9 }
  0x51   : > { %335 = vperm.xlu0 %620, %v623_v10  }
  0xb0   : > { %v326_v12 = vpop.xlane.xlu0 %325 }
  0xc3   : > { %v336_v13 = vpop.permute.xlu0 %335 }
  0xc4   : > { %v338_v14 = vadd.f32 %v336_v13, %v326_v12 }
  0xc6   : > { %343 = vperm.xlu1 %621, %v338_v14  }
  0xce   : > { %622 = vset.pattern.permute.xlu1 %v332_v1 }
 0x138   : > { %v344_v17 = vpop.permute.xlu1 %343 }
 0x139   : > { %v347_v18 = vperm.slane %v344_v17, %v346_v16 }
 0x13b   : > { %550 = vmatmul.msk.f32.vlgmr.msra.gmra.mxu0 %vm348_vm1, %v347_v18 }
 0x1b8   : > { %v371_v21 = vpop.f32.mrf.mxu0 }
 0x1b9   : > { %v372_v22 = vadd.f32 %v371_v21, %v340_v20 }
 0x1bb   : > { %v375_v23 = vmul.f32 0.01, %v372_v22  ;;  %vm374_vm3 = vcmp.gt.f32.partialorder %v372_v22, 0.0 }
 0x1bd   : > { %v376_v24 = vsel %vm374_vm3, %v372_v22, %v375_v23 }
 0x1be   : > { %552 = vmatmul.msk.f32.vlgmr.msra.gmra.mxu1 %vm379_vm4, %v376_v24 }
 0x23b   : > { %v404_v26 = vpop.f32.mrf.mxu1 }
 0x23c   : > { %v405_v27 = vadd.f32 %v404_v26, %v378_v25 }
 0x23e   : > { %v553_v28 = vmul.f32 -1.442695, %v405_v27 }
 0x240   : > { %624 = vpow2.f32 %v553_v28 }
 0x246   : > { %v625_v29 = vpop.eup %624 }
 0x247   : > { %v410_v30 = vadd.f32 1.0, %v625_v29 }
 0x249   : > { %626 = vrcp.f32 %v410_v30  ;;  %v422_v34 = vand.u32 2147483648, %v410_v30  ;;  %v420_v36 = vand.u32 2147483647, %v410_v30  ;;  %vm416_vm6 = vweird.f32 %v410_v30 }
 0x24b   : > { %v423_v38 = vor.u32 1.1754944e-38, %v422_v34  ;;  %vm421_vm8 = vcmp.eq.f32.partialorder %v420_v36, 8.507059e+37 }
 0x24f   : > { %v627_v31 = vpop.eup %626 }
 0x250   : > { %v412_v32 = vmul.f32 %v627_v31, %v410_v30  ;;  %vm417_vm5 = vweird.f32 %v627_v31 }
 0x251   : > { %vm418_vm7 = vmor %vm416_vm6, %vm417_vm5 }
 0x252   : > { %v413_v33 = vsub.f32 1.0, %v412_v32 }
 0x254   : > { %v414_v35 = vmul.f32 %v627_v31, %v413_v33 }
 0x256   : > { %v415_v37 = vadd.f32 %v627_v31, %v414_v35 }
 0x258   : > { %v419_v39 = vsel %vm418_vm7, %v627_v31, %v415_v37 }
 0x259   : > { %v424_v40 = vsel %vm421_vm8, %v423_v38, %v419_v39 }
 0x25a   : > { %v426_v41 = vperm.slane %v424_v40, 0 }
 0x25c   : > { %431 = vperm.xlu1 %622, %v426_v41  }
 0x2ce   : > { %v432_v45 = vpop.permute.xlu1 %431 }
 0x2cf   : > { %v437_v46 = vperm.slane %v432_v45, %v436_v44 }
 0x2d1   : > { %v439_v47 = vmul.f32 %v437_v46, %v910_v2 }
 0x2d3   : > { %440 = vst [vmem:[%s311_s12] sm:$0xff] %v439_v47 }
 0x2d4   : > { %715 = shalt.err (!%p712_p11)
}
 0x2d5   : > { %567 = dma.vmem_to_hbm [thread:$0]  (%p869_p3), %s456_s10, 128, %s458_s13, %s442_s14  }
 0x2d6 PF: > { %s469_s20 = sand.u32 1, %s746_s24   ;;  %p982_p12 = scmp.ge.s32.totalorder %s758_s27, 2 }
 0x2d7   : > { %s470_s9 = scalar_lea.sflag [#allocation4], %s469_s20 }
 0x2d8   : > { %p578_p13 = pnand %p982_p12, %p838_p6 }
 0x2da   : > { %p579_p0 = pneg %p578_p13 }
 0x2dc   : > { %741 = dma.done.wait (%p579_p0), %s470_s9, 128  }
 0x2dd   : > { %743 = vsyncadd (%p579_p0), %s470_s9, 4294967168  ;;  %p21_p5 = scmp.ge.s32.totalorder %s856_s15, 4   ;;  %s983_s24 = smov %s750_s25 }
 0x2de   : > { %s984_s25 = smov %s754_s26  ;;  %s985_s26 = smov %s865_s18 }
 0x2df   : > { %s986_s27 = smov %s856_s15  ;;  %23 = sbr.rel (!%p21_p5) target bundleno = 8 (0x8), region = 97 }
 0x2e4   :  { %476 = vsyncpa [#allocation3], 1 }
 0x2e5   :  { %478 = vsyncpa [#allocation3 + $0x1], 1 }
 0x2e6   :  { %479 = vsyncpa [#allocation6], 1 }
 0x2e7   :  { %480 = vsyncpa [#allocation4], 1 }
 0x2e8   :  { %482 = vsyncpa [#allocation4 + $0x1], 1 }

</bundles_post_ra>
